<compile_context>
chip_gen: v6e
topology: v6e:2x2x1
jax: 0.10.0
libtpu: 0.0.40
codegen_flags: <defaults>
</compile_context>

<pallas_src>
import jax
import jax.numpy as jnp
from jax.experimental import pallas as pl
from jax.experimental.pallas import tpu as pltpu


# --------------------------------------------------------------------------
# Fused Pallas kernel: features = relu(x @ W1 + b1); scores = features @ W2 + b2
# --------------------------------------------------------------------------
def _model_fwd_kernel(x_ref, w1_ref, b1_ref, w2_ref, b2_ref,
                      scores_ref, feat_ref):
    # Backbone stand-in (see TODO above): flatten + Linear + ReLU.
    # bf16 MXU operands, f32 accumulation.
    feat_f32 = jnp.dot(x_ref[...], w1_ref[...],
                       preferred_element_type=jnp.float32)
    feat_f32 = jnp.maximum(feat_f32 + b1_ref[...], 0.0)
    feat_ref[...] = feat_f32.astype(feat_ref.dtype)

    # Classifier: Linear(final_feat_dim, num_classes), zero-init bias.
    # Feature stays VMEM/vreg-resident; re-cast to bf16 only for the MXU.
    scores = jnp.dot(feat_f32.astype(w2_ref.dtype), w2_ref[...],
                     preferred_element_type=jnp.float32)
    scores_ref[...] = (scores + b2_ref[...]).astype(scores_ref.dtype)


def model_forward(params, x):
    """Returns (scores, features) like Model.forward."""
    N = x.shape[0]
    x_flat = x.reshape(N, -1).astype(jnp.bfloat16)
    feat_dim = params["feat_w"].shape[1]
    num_classes = params["cls_w"].shape[1]

    vmem = pl.BlockSpec(memory_space=pltpu.MemorySpace.VMEM)
    scores, feat = pl.pallas_call(
        _model_fwd_kernel,
        out_shape=(jax.ShapeDtypeStruct((N, num_classes), jnp.float32),
                   jax.ShapeDtypeStruct((N, feat_dim), jnp.float32)),
        in_specs=[vmem, vmem, vmem, vmem, vmem],
        out_specs=(vmem, vmem),
    )(x_flat, params["feat_w"], params["feat_b"],
      params["cls_w"], params["cls_b"])
    return scores, feat


# --------------------------------------------------------------------------
# Parameters (deterministic, synthetic).  All layout prep hoisted here.
# --------------------------------------------------------------------------
def init_params(key, in_dim, feat_dim, num_classes):
    k1, k2 = jax.random.split(key)
    s = 0.05
    return {
        # TODO(synk): stand-in for the external model_dict[net] backbone.
        "feat_w": (jax.random.normal(k1, (in_dim, feat_dim)) * s).astype(jnp.bfloat16),
        "feat_b": jnp.zeros((1, feat_dim), jnp.float32),
        # classifier Linear(final_feat_dim, num_classes); bias.data.fill_(0)
        "cls_w": (jax.random.normal(k2, (feat_dim, num_classes)) * s).astype(jnp.bfloat16),
        "cls_b": jnp.zeros((1, num_classes), jnp.float32),
    }


# --------------------------------------------------------------------------
if __name__ == "__main__":
    key = jax.random.PRNGKey(0)
    k_x, k_p = jax.random.split(key)

    # small shapes: batch=2, NCHW input (2, 3, 16, 16), final_feat_dim=128,
    # num_classes=5
    x = jax.random.normal(k_x, (2, 3, 16, 16), dtype=jnp.float32)
    params = init_params(k_p, in_dim=3 * 16 * 16, feat_dim=128, num_classes=5)

    fwd = jax.jit(model_forward)
    scores, feat = fwd(params, x)
    jax.block_until_ready((scores, feat))

    assert scores.shape == (2, 5)
    assert feat.shape == (2, 128)
    print("KERNEL_OK")
</pallas_src>

<mosaic_0001>
module attributes {stable_mosaic.version = 11 : i64} {
  func.func @_model_fwd_kernel(%arg0: memref<2x768xbf16, #tpu.memory_space<vmem>>, %arg1: memref<768x128xbf16, #tpu.memory_space<vmem>>, %arg2: memref<1x128xf32, #tpu.memory_space<vmem>>, %arg3: memref<128x5xbf16, #tpu.memory_space<vmem>>, %arg4: memref<1x5xf32, #tpu.memory_space<vmem>>, %arg5: memref<2x5xf32, #tpu.memory_space<vmem>>, %arg6: memref<2x128xf32, #tpu.memory_space<vmem>>) attributes {dimension_semantics = [], scalar_prefetch = 0 : i64, scratch_operands = 0 : i64, tpu.core_type = #tpu.core_type<tc>} {
    %c0 = arith.constant 0 : index
    %c0_0 = arith.constant 0 : index
    %0 = vector.load %arg0[%c0, %c0_0] : memref<2x768xbf16, #tpu.memory_space<vmem>>, vector<2x768xbf16>
    %c0_1 = arith.constant 0 : index
    %c0_2 = arith.constant 0 : index
    %1 = vector.load %arg1[%c0_1, %c0_2] : memref<768x128xbf16, #tpu.memory_space<vmem>>, vector<768x128xbf16>
    %cst = arith.constant dense<0.000000e+00> : vector<2x128xf32>
    %2 = tpu.matmul %0, %1, %cst {dimension_numbers = #tpu.dot_dimension_numbers<[1], [0], [0], [1], [0, 0, 1, 1], [], []>} : vector<2x768xbf16>, vector<768x128xbf16>, vector<2x128xf32> -> vector<2x128xf32>
    %c0_3 = arith.constant 0 : index
    %c0_4 = arith.constant 0 : index
    %3 = vector.load %arg2[%c0_3, %c0_4] : memref<1x128xf32, #tpu.memory_space<vmem>>, vector<1x128xf32>
    %4 = vector.broadcast %3 : vector<1x128xf32> to vector<2x128xf32>
    %5 = arith.addf %2, %4 : vector<2x128xf32>
    %cst_5 = arith.constant 0.000000e+00 : f32
    %6 = vector.broadcast %cst_5 : f32 to vector<2x128xf32>
    %7 = arith.maximumf %5, %6 : vector<2x128xf32>
    %c0_6 = arith.constant 0 : index
    %c0_7 = arith.constant 0 : index
    %8 = vector.load %arg6[%c0_6, %c0_7] : memref<2x128xf32, #tpu.memory_space<vmem>>, vector<2x128xf32>
    tpu.vector_store %arg6[%c0_6, %c0_7], %7 {strides = array<i32>} : memref<2x128xf32, #tpu.memory_space<vmem>>, vector<2x128xf32>,
    %9 = arith.truncf %7 : vector<2x128xf32> to vector<2x128xbf16>
    %c0_8 = arith.constant 0 : index
    %c0_9 = arith.constant 0 : index
    %10 = vector.load %arg3[%c0_8, %c0_9] : memref<128x5xbf16, #tpu.memory_space<vmem>>, vector<128x5xbf16>
    %cst_10 = arith.constant dense<0.000000e+00> : vector<2x5xf32>
    %11 = tpu.matmul %9, %10, %cst_10 {dimension_numbers = #tpu.dot_dimension_numbers<[1], [0], [0], [1], [0, 0, 1, 1], [], []>} : vector<2x128xbf16>, vector<128x5xbf16>, vector<2x5xf32> -> vector<2x5xf32>
    %c0_11 = arith.constant 0 : index
    %c0_12 = arith.constant 0 : index
    %12 = vector.load %arg4[%c0_11, %c0_12] : memref<1x5xf32, #tpu.memory_space<vmem>>, vector<1x5xf32>
    %13 = vector.broadcast %12 : vector<1x5xf32> to vector<2x5xf32>
    %14 = arith.addf %11, %13 : vector<2x5xf32>
    %c0_13 = arith.constant 0 : index
    %c0_14 = arith.constant 0 : index
    %15 = vector.load %arg5[%c0_13, %c0_14] : memref<2x5xf32, #tpu.memory_space<vmem>>, vector<2x5xf32>
    tpu.vector_store %arg5[%c0_13, %c0_14], %14 {strides = array<i32>} : memref<2x5xf32, #tpu.memory_space<vmem>>, vector<2x5xf32>,
    return
  }
}

</mosaic_0001>

<bundles_post_ra>
// kernel: model_forward.1
= control target key start
LH: loop header
LB: loop body
LE: loop exit
PB: predicated region body
PF: predicated region fallthrough
CT: control target
= control target key end

     0   :  { %12 = vsyncpa [#allocation3], 0  ;;  %s1119_s0 = inlined_call_operand.vmem [shape: bf16[2,768], index: 0, kind: input, shape index: {}]   ;;  %s1120_s1 = inlined_call_operand.hbm [shape: bf16[768,128], index: 1, kind: input, shape index: {}]   ;;  %s1121_s2 = inlined_call_operand.vmem [shape: f32[1,128], index: 2, kind: input, shape index: {}]   ;;  %s1122_s3 = inlined_call_operand.vmem [shape: bf16[128,5], index: 3, kind: input, shape index: {}]   ;;  %s1123_s4 = inlined_call_operand.vmem [shape: f32[1,5], index: 4, kind: input, shape index: {}]   ;;  %s1124_s5 = inlined_call_operand.hbm [shape: f32[2,5], index: 5, kind: output, shape index: {0}]   ;;  %s1125_s6 = inlined_call_operand.hbm [shape: f32[2,128], index: 6, kind: output, shape index: {1}]  }
   0x1   :  { %13 = vsyncpa [#allocation4], 0 }
   0x2   :  { %14 = vsyncpa [#allocation7], 0  ;;  %s1034_s21 = smov [#allocation2]  }
   0x3   :  { %s22_s22 = sshll.u32 %s1034_s21, 4  ;;  %s23_s22 = int_to_ptr.vmem [resolvable:$true] %s22_s22 }
   0x4   :  { %s976_s23 = scalar_lea.vmem %s23_s22, 6144  ;;  %p981_p1 = scmp.lt.s32.totalorder %s23_s22, %s23_s22 }
   0x5   :  { %p977_p0 = scmp.ne.s32.totalorder %s23_s22, %s976_s23  ;;  %p982_p2 = scmp.lt.s32.totalorder %s976_s23, %s976_s23 }
   0x7   :  { %p983_p3 = por %p982_p2, %p981_p1 }
   0x9   :  { %p984_p4 = pnand %p983_p3, %p977_p0 }
   0xb   :  { %987 = shalt.err (!%p984_p4)
}
   0xc   :  { %s1035_s24 = smov 64   ;;  %s1036_s25 = smov 4  }
   0xd   :  { %28 = dma.hbm_to_vmem [thread:$0]  %s1120_s1, 6144, %s23_s22, [#allocation3], %s1035_s24, %s1035_s24, %s1036_s25  }
   0xe   :  { %1028 = dma.done.wait [#allocation3], 6144  }
   0xf   :  { %1029 = vsyncadd [#allocation3], 4294961152  ;;  %v911_v0 = vld [vmem:[#allocation2 + $0x78] sm:$0xff]   ;;  %v915_v4 = vld [vmem:[#allocation2 + $0x70] sm:$0xff]   ;;  %v1037_v21 = vmov 1966171168   ;;  %v148_v23 = vlaneseq }
  0x10   :  { %v912_v1 = vld [vmem:[#allocation2 + $0x38] sm:$0xff]   ;;  %808 = vmatprep.subr.bf16.mxu0 %v911_v0  ;;  %v916_v5 = vld [vmem:[#allocation2 + $0x30] sm:$0xff]   ;;  %v919_v8 = vld [vmem:[#allocation2 + $0x68] sm:$0xff]   ;;  %v146_v22 = vunpack.c.l.s4 %v1037_v21  ;;  %vm1039_vm0 = vmmov 0  }
  0x11   :  { %v913_v2 = vld [vmem:[#allocation2 + $0xf8] sm:$0xff]   ;;  %809 = vmatpush3.bf16.msra.mxu0 %v912_v1  ;;  %v917_v6 = vld [vmem:[#allocation2 + $0xf0] sm:$0xff]   ;;  %v920_v9 = vld [vmem:[#allocation2 + $0x28] sm:$0xff]   ;;  %v149_v29 = vshrl.u32 %v148_v23, 7 }
  0x12   :  { %v914_v3 = vld [vmem:[#allocation2 + $0xb8] sm:$0xff]   ;;  %830 = vmatprep.subr.bf16.mxu1 %v913_v2  ;;  %810 = vmatprep.subr.bf16.mxu0 %v915_v4  ;;  %v918_v7 = vld [vmem:[#allocation2 + $0xb0] sm:$0xff]   ;;  %v921_v10 = vld [vmem:[#allocation2 + $0xe8] sm:$0xff]   ;;  %v147_v28 = vunpack.c.0.s8 %v146_v22 }
  0x13   :  { %831 = vmatpush3.bf16.msra.mxu1 %v914_v3  ;;  %v922_v11 = vld [vmem:[#allocation2 + $0xa8] sm:$0xff]   ;;  %v923_v12 = vld [vmem:[#allocation2 + $0x60] sm:$0xff]   ;;  %v927_v16 = vld [vmem:[#allocation2 + $0x58] sm:$0xff]   ;;  %v1038_v3 = vmov 0.0  }
  0x14   :  { %832 = vmatprep.subr.bf16.mxu1 %v917_v6  ;;  %v924_v13 = vld [vmem:[#allocation2 + $0x20] sm:$0xff]   ;;  %v928_v17 = vld [vmem:[#allocation2 + $0x18] sm:$0xff]   ;;  %v931_v20 = vld [vmem:[#allocation2 + $0x50] sm:$0xff]   ;;  %v150_v34 = vsub.s32 %v147_v28, %v149_v29 }
  0x15   :  { %811 = vmatpush3.bf16.msra.mxu0 %v916_v5  ;;  %v925_v14 = vld [vmem:[#allocation2 + $0xe0] sm:$0xff]   ;;  %v929_v18 = vld [vmem:[#allocation2 + $0xd8] sm:$0xff]   ;;  %v932_v24 = vld [vmem:[#allocation2 + $0x10] sm:$0xff]  }
  0x16   :  { %812 = vmatprep.subr.bf16.mxu0 %v919_v8  ;;  %v926_v15 = vld [vmem:[#allocation2 + $0xa0] sm:$0xff]   ;;  %v930_v19 = vld [vmem:[#allocation2 + $0x98] sm:$0xff]   ;;  %v933_v25 = vld [vmem:[#allocation2 + $0xd0] sm:$0xff]  }
  0x17   :  { %833 = vmatpush3.bf16.msra.mxu1 %v918_v7  ;;  %v934_v26 = vld [vmem:[#allocation2 + $0x90] sm:$0xff]   ;;  %v935_v27 = vld [vmem:[#allocation2 + $0x48] sm:$0xff]   ;;  %v939_v33 = vld [vmem:[#allocation2 + $0x40] sm:$0xff]  }
  0x18   :  { %834 = vmatprep.subr.bf16.mxu1 %v921_v10  ;;  %v936_v30 = vld [vmem:[#allocation2 + $0x8] sm:$0xff]   ;;  %v940_v35 = vld [vmem:[#allocation2] sm:$0xff]   ;;  %v944_v41 = vld [vmem:[#allocation2 + $0x178] sm:$0xff]  }
  0x19   :  { %813 = vmatpush3.bf16.msra.mxu0 %v920_v9  ;;  %v937_v31 = vld [vmem:[#allocation2 + $0xc8] sm:$0xff]   ;;  %v941_v36 = vld [vmem:[#allocation2 + $0xc0] sm:$0xff]   ;;  %v945_v46 = vld [vmem:[#allocation2 + $0x138] sm:$0xff]  }
  0x1a   :  { %814 = vmatprep.subr.bf16.mxu0 %v923_v12  ;;  %v938_v32 = vld [vmem:[#allocation2 + $0x88] sm:$0xff]   ;;  %v39_v37 = vld [vmem:[%s1119_s0] sm:$0x3f]  ;;  %v946_v49 = vld [vmem:[#allocation2 + $0x170] sm:$0xff]  }
  0x1b   :  { %835 = vmatpush3.bf16.msra.mxu1 %v922_v11  ;;  %v144_v38 = vcombine.high %v39_v37, %v39_v37  ;;  %v151_v39 = vrot.slane %v39_v37, %v150_v34  ;;  %v943_v40 = vld [vmem:[#allocation2 + $0x80] sm:$0xff]   ;;  %v947_v52 = vld [vmem:[#allocation2 + $0x130] sm:$0xff]   ;;  %v948_v53 = vld [vmem:[#allocation2 + $0x168] sm:$0xff]  }
  0x1c   :  { %836 = vmatprep.subr.bf16.mxu1 %v925_v14  ;;  %v949_v54 = vld [vmem:[#allocation2 + $0x128] sm:$0xff]   ;;  %v950_v55 = vld [vmem:[#allocation2 + $0x160] sm:$0xff]   ;;  %v952_v57 = vld [vmem:[#allocation2 + $0x158] sm:$0xff]  }
  0x1d   :  { %815 = vmatpush3.bf16.msra.mxu0 %v924_v13  ;;  %v159_v42 = vcombine.high %v151_v39, %v151_v39  ;;  %v167_v43 = vrot.slane %v151_v39, %v150_v34  ;;  %v158_v44 = vrot.slane %v144_v38, %v150_v34  ;;  %v951_v56 = vld [vmem:[#allocation2 + $0x120] sm:$0xff]   ;;  %v953_v58 = vld [vmem:[#allocation2 + $0x118] sm:$0xff]   ;;  %v954_v59 = vld [vmem:[#allocation2 + $0x150] sm:$0xff]  }
  0x1e   :  { %816 = vmatprep.subr.bf16.mxu0 %v927_v16  ;;  %v955_v60 = vld [vmem:[#allocation2 + $0x110] sm:$0xff]   ;;  %v956_v61 = vld [vmem:[#allocation2 + $0x148] sm:$0xff]   ;;  %v958_v63 = vld [vmem:[#allocation2 + $0x140] sm:$0xff]  }
  0x1f   :  { %837 = vmatpush3.bf16.msra.mxu1 %v926_v15  ;;  %v181_v45 = vrot.slane %v159_v42, %v150_v34  ;;  %v160_v47 = vcombine.high %v158_v44, %v158_v44  ;;  %v189_v48 = vcombine.high %v167_v43, %v167_v43  ;;  %v957_v62 = vld [vmem:[#allocation2 + $0x108] sm:$0xff]   ;;  %v959_v0 = vld [vmem:[#allocation2 + $0x100] sm:$0xff]   ;;  %v174_v1 = vrot.slane %v158_v44, %v150_v34  ;;  %v960_v2 = vld [vmem:[%s1122_s3 + $0x38] sm:$0xff]  }
  0x20   :  { %838 = vmatprep.subr.bf16.mxu1 %v929_v18  ;;  %v961_v4 = vld [vmem:[%s1122_s3 + $0x30] sm:$0xff]   ;;  %v962_v5 = vld [vmem:[%s1122_s3 + $0x28] sm:$0xff]   ;;  %v963_v6 = vld [vmem:[%s1122_s3 + $0x20] sm:$0xff]  }
  0x21   :  { %817 = vmatpush3.bf16.msra.mxu0 %v928_v17  ;;  %517 = vmatprep.mubr.bf16.mxu0 %v181_v45  ;;  %v190_v50 = vcombine.high %v181_v45, %v181_v45  ;;  %v188_v51 = vrot.slane %v160_v47, %v150_v34  ;;  %v964_v7 = vld [vmem:[%s1122_s3 + $0x18] sm:$0xff]   ;;  %v965_v8 = vld [vmem:[%s1122_s3 + $0x10] sm:$0xff]   ;;  %v966_v9 = vld [vmem:[%s1122_s3 + $0x8] sm:$0xff]  }
  0x22   :  { %818 = vmatprep.subr.bf16.mxu0 %v931_v20  ;;  %v967_v10 = vld [vmem:[%s1122_s3] sm:$0xff]   ;;  %s1040_s3 = smov [#allocation6]  }
  0x23   :  { %839 = vmatpush3.bf16.msra.mxu1 %v930_v19  ;;  %557 = vmatprep.mubr.bf16.mxu1 %v190_v50  ;;  %v750_v20 = vld [vmem:[%s1121_s2] ss:$0 sm:$0xff]  ;;  %s737_s22 = sshll.u32 %s1040_s3, 4  ;;  %s738_s22 = int_to_ptr.vmem [resolvable:$true] %s737_s22 }
  0x24   :  { %840 = vmatprep.subr.bf16.mxu1 %v933_v25  ;;  %s988_s23 = scalar_lea.vmem %s738_s22, 32  ;;  %p993_p6 = scmp.lt.s32.totalorder %s738_s22, %s738_s22 }
  0x25   :  { %819 = vmatpush3.bf16.msra.mxu0 %v932_v24  ;;  %p989_p5 = scmp.ne.s32.totalorder %s738_s22, %s988_s23  ;;  %p994_p7 = scmp.lt.s32.totalorder %s988_s23, %s988_s23 }
  0x26   :  { %820 = vmatprep.subr.bf16.mxu0 %v935_v27 }
  0x27   :  { %841 = vmatpush3.bf16.msra.mxu1 %v934_v26  ;;  %p995_p8 = por %p994_p7, %p993_p6 }
  0x28   :  { %842 = vmatprep.subr.bf16.mxu1 %v937_v31 }
  0x29   :  { %821 = vmatpush3.bf16.msra.mxu0 %v936_v30  ;;  %p996_p9 = pnand %p995_p8, %p989_p5 }
  0x2a   :  { %822 = vmatprep.subr.bf16.mxu0 %v939_v33 }
  0x2b   :  { %843 = vmatpush3.bf16.msra.mxu1 %v938_v32 }
  0x2c   :  { %844 = vmatprep.subr.bf16.mxu1 %v941_v36 }
  0x2d   :  { %823 = vmatpush3.bf16.msra.mxu0 %v940_v35 }
  0x2e   :  { %852 = vmatprep.subr.bf16.mxu0 %v944_v41 }
  0x2f   :  { %845 = vmatpush3.bf16.msra.mxu1 %v943_v40 }
  0x30   :  { %518 = vmatmul.mubr.bf16.vlgmr.msra.gmra.mxu0 %v167_v43  ;;  %883 = vmatprep.subr.bf16.mxu1 %v1038_v3 }
  0x31   :  { %853 = vmatpush3.bf16.msra.mxu0 %v945_v46  ;;  %597 = vmatprep.mubr.bf16.mxu0 %v188_v51 }
  0x32   :  { %558 = vmatmul.mubr.bf16.vlgmr.msra.gmra.mxu1 %v189_v48  ;;  %854 = vmatprep.subr.bf16.mxu0 %v946_v49 }
  0x33   :  { %884 = vmatpush3.bf16.msra.mxu1 %v960_v2  ;;  %899 = vmatprep.mubr.msk.bf16.mxu1 %vm1039_vm0, %v1038_v3 }
  0x34   :  { %885 = vmatprep.subr.bf16.mxu1 %v1038_v3 }
  0x35   :  { %855 = vmatpush3.bf16.msra.mxu0 %v947_v52 }
  0x36   :  { %856 = vmatprep.subr.bf16.mxu0 %v948_v53 }
  0x37   :  { %886 = vmatpush3.bf16.msra.mxu1 %v961_v4 }
  0x38   :  { %887 = vmatprep.subr.bf16.mxu1 %v1038_v3 }
  0x39   :  { %857 = vmatpush3.bf16.msra.mxu0 %v949_v54 }
  0x3a   :  { %858 = vmatprep.subr.bf16.mxu0 %v950_v55 }
  0x3b   :  { %888 = vmatpush3.bf16.msra.mxu1 %v962_v5 }
  0x3c   :  { %889 = vmatprep.subr.bf16.mxu1 %v1038_v3 }
  0x3d   :  { %859 = vmatpush3.bf16.msra.mxu0 %v951_v56 }
  0x3e   :  { %860 = vmatprep.subr.bf16.mxu0 %v952_v57 }
  0x3f   :  { %890 = vmatpush3.bf16.msra.mxu1 %v963_v6 }
  0x40   :  { %891 = vmatprep.subr.bf16.mxu1 %v1038_v3 }
  0x41   :  { %861 = vmatpush3.bf16.msra.mxu0 %v953_v58 }
  0x42   :  { %862 = vmatprep.subr.bf16.mxu0 %v954_v59 }
  0x43   :  { %892 = vmatpush3.bf16.msra.mxu1 %v964_v7 }
  0x44   :  { %893 = vmatprep.subr.bf16.mxu1 %v1038_v3 }
  0x45   :  { %863 = vmatpush3.bf16.msra.mxu0 %v955_v60 }
  0x46   :  { %864 = vmatprep.subr.bf16.mxu0 %v956_v61 }
  0x47   :  { %894 = vmatpush3.bf16.msra.mxu1 %v965_v8 }
  0x48   :  { %895 = vmatprep.subr.bf16.mxu1 %v1038_v3 }
  0x49   :  { %865 = vmatpush3.bf16.msra.mxu0 %v957_v62 }
  0x4a   :  { %866 = vmatprep.subr.bf16.mxu0 %v958_v63 }
  0x4b   :  { %896 = vmatpush3.bf16.msra.mxu1 %v966_v9 }
  0x4c   :  { %897 = vmatprep.subr.bf16.mxu1 %v1038_v3 }
  0x4d   :  { %867 = vmatpush3.bf16.msra.mxu0 %v959_v0 }
  0x4f   :  { %898 = vmatpush3.bf16.msra.mxu1 %v967_v10 }
  0x50   :  { %598 = vmatmul.mubr.bf16.vlgmr.msra.gmra.mxu0 %v174_v1 }
  0xf0   :  { %v824_v11 = vpop.f32.mrf.mxu0 }
  0xf2   :  { %v825_v12 = vpop.f32.mrf.mxu0  ;;  %v846_v13 = vpop.f32.mrf.mxu1 }
  0xf3   :  { %v826_v19 = vadd.f32 %v825_v12, %v824_v11 }
  0xf4   :  { %v827_v14 = vpop.f32.mrf.mxu0  ;;  %v847_v15 = vpop.f32.mrf.mxu1 }
  0xf5   :  { %v520_v21 = vadd.f32 %v826_v19, %v750_v20  ;;  %v848_v22 = vadd.f32 %v847_v15, %v846_v13 }
  0xf6   :  { %v828_v16 = vpop.f32.mrf.mxu0  ;;  %v849_v17 = vpop.f32.mrf.mxu1 }
  0xf7   :  { %v560_v25 = vadd.f32 %v848_v22, %v520_v21 }
  0xf8   :  { %v850_v18 = vpop.f32.mrf.mxu1 }
 0x110   :  { %v868_v23 = vpop.f32.mrf.mxu0 }
 0x112   :  { %v869_v24 = vpop.f32.mrf.mxu0 }
 0x113   :  { %v870_v26 = vadd.f32 %v869_v24, %v868_v23 }
 0x114   :  { %v871_v27 = vpop.f32.mrf.mxu0 }
 0x115   :  { %v600_v28 = vadd.f32 %v870_v26, %v560_v25 }
 0x116   :  { %v872_v29 = vpop.f32.mrf.mxu0 }
 0x117   :  { %v605_v30 = vmax.f32 %v600_v28, 0.0 }
 0x119   :  { %v607_v31 = vpack.c.bf16 %v605_v30, %v605_v30  ;;  %606 = vst [vmem:[#allocation6] sm:$0x3] %v605_v30 }
 0x11b   :  { %900 = vmatmul.mubr.bf16.vlgmr.msra.gmra.mxu1 %v607_v31 }
 0x11c   :  { %999 = shalt.err (!%p996_p9)
}
 0x11d   :  { %740 = dma.vmem_to_hbm [thread:$0]  %s738_s22, 32, %s1125_s6, [#allocation7]   ;;  %v799_v32 = vld [vmem:[%s1123_s4] ss:$0 sm:$0xff]  ;;  %vm719_vm1 = vcmask 33792  }
 0x11e   :  { %s1041_s27 = smov [#allocation5]  }
 0x11f   :  { %s727_s1 = sshll.u32 %s1041_s27, 4  ;;  %s728_s1 = int_to_ptr.vmem [resolvable:$true] %s727_s1 }
 0x120   :  { %s1008_s28 = scalar_lea.vmem %s728_s1, 32  ;;  %p1013_p11 = scmp.lt.s32.totalorder %s728_s1, %s728_s1 }
 0x121   :  { %p1009_p10 = scmp.ne.s32.totalorder %s728_s1, %s1008_s28  ;;  %p1014_p12 = scmp.lt.s32.totalorder %s1008_s28, %s1008_s28 }
 0x123   :  { %p1015_p13 = por %p1014_p12, %p1013_p11 }
 0x125   :  { %p1016_p0 = pnand %p1015_p13, %p1009_p10 }
 0x1db   :  { %v713_v33 = vpop.f32.mrf.mxu1 }
 0x1dc   :  { %v714_v34 = vadd.f32 %v799_v32, %v713_v33 }
 0x1dd   :  { %v901_v35 = vpop.f32.mrf.mxu1 }
 0x1de   :  { %720 = vst.msk [vmem:[#allocation5] sm:$0x3] %vm719_vm1, %v714_v34 }
 0x1df   :  { %v716_v36 = vpop.f32.mrf.mxu1 }
 0x1e0   :  { %1019 = shalt.err (!%p1016_p0)
}
 0x1e1   :  { %730 = dma.vmem_to_hbm [thread:$0]  %s728_s1, 32, %s1124_s5, [#allocation4]   ;;  %v902_v37 = vpop.f32.mrf.mxu1 }
 0x1e2   :  { %1030 = dma.done.wait [#allocation4], 32  }
 0x1e3   :  { %1031 = vsyncadd [#allocation4], 4294967264 }
 0x1e4   :  { %1032 = dma.done.wait [#allocation7], 32  }
 0x1e5   :  { %1033 = vsyncadd [#allocation7], 4294967264 }
 0x1e6   :  { %747 = vsyncpa [#allocation3], 1 }
 0x1e7   :  { %748 = vsyncpa [#allocation4], 1 }
 0x1e8   :  { %749 = vsyncpa [#allocation7], 1 }

</bundles_post_ra>
